<compile_context>
chip_gen: v5e
topology: v5e:2x2
jax: 0.10.0
libtpu: 0.0.40
codegen_flags: <defaults>
</compile_context>

<pallas_src>
import jax
import jax.numpy as jnp
from jax import lax
from jax.experimental import pallas as pl
from jax.experimental.pallas import tpu as pltpu

# ----------------------------- model config ---------------------------------
B = 2              # batch
NUM_OBJ = 8        # o -- object number
FEAT_DIM = 64      # f -- visual feature size
SEQ_LEN = 8        # MAX_VQA_LENGTH is 20 in the real model; small here
HID = 32           # lxrt_encoder.dim (768 in the real model)
NUM_ANSWERS = 16   # ~3129 in the real model
VOCAB = 50

# ------------------------- lane/sublane padded dims --------------------------
def _ru128(n):
    return ((n + 127) // 128) * 128

B_PAD = 8                        # sublane-aligned batch rows (slice back to B)
FP = FEAT_DIM + 4                # fused feat|pos input width
FP_P = _ru128(FP)                # 128
HID_P = _ru128(HID)              # 128
H2 = 2 * HID                     # real LayerNorm width (64 here, 1536 real)
H2_P = _ru128(H2 + 1)            # +1 reserves a spare lane column for folded b2
BIAS_COL = H2                    # padded column of y that carries 1.0

ANS_P0 = _ru128(NUM_ANSWERS)
TN = min(512, ANS_P0)            # answer tile width (>=512 at real scale)
ANS_P = ((ANS_P0 + TN - 1) // TN) * TN
VEC_W = max(HID_P, H2_P)         # width of the packed bias/gamma/beta slab


# ------------------------------ kernel helpers -------------------------------
def _gelu_tanh(x):
    # tanh-approximate GeLU (routes to the EUP); matches erf BertGeLU ~1e-3.
    c = jnp.float32(0.7978845608028654)   # sqrt(2/pi)
    return 0.5 * x * (1.0 + jnp.tanh(c * (x + 0.044715 * x * x * x)))


# --------------------------------- kernels -----------------------------------
def prologue_kernel(fpp_ref, sentp_ref, wfp_ref, wpool_ref, w1_ref, vecs_ref,
                    y_ref):
    """Encoder stand-in + logit_fc[0:3]; runs once (gridless, all blocks whole)."""
    # fused pooled (feat | pos) projection: one bf16 matmul, f32 accumulate.
    v = jnp.dot(fpp_ref[...], wfp_ref[...],
                preferred_element_type=jnp.float32)               # (B_PAD, HID_P)

    bpool = vecs_ref[0:1, :HID_P]
    x = jnp.tanh(jnp.dot((v + sentp_ref[...]).astype(jnp.bfloat16),
                         wpool_ref[...],
                         preferred_element_type=jnp.float32) + bpool)

    # logit_fc[0:3]: Linear -> GeLU -> BertLayerNorm(eps=1e-12)
    b1 = vecs_ref[1:2, :H2_P]
    gamma = vecs_ref[2:3, :H2_P]
    beta = vecs_ref[3:4, :H2_P]

    h = jnp.dot(x.astype(jnp.bfloat16), w1_ref[...],
                preferred_element_type=jnp.float32) + b1          # (B_PAD, H2_P)
    g = _gelu_tanh(h)                                             # pad tail == 0
    # statistics over the REAL width H2 (padded tail of g is exactly 0).
    inv_d = jnp.float32(1.0 / H2)
    mu = jnp.sum(g, axis=-1, keepdims=True) * inv_d
    var = jnp.sum(g * g, axis=-1, keepdims=True) * inv_d - mu * mu
    n = (g - mu) * lax.rsqrt(var + 1e-12)
    y = n * gamma + beta                                          # tail stays 0

    # fold the final-layer bias: column BIAS_COL of y holds 1.0, the matching
    # row of w2 (set in the wrapper) holds b2 -> the streamer is a pure matmul.
    col = lax.broadcasted_iota(jnp.int32, (B_PAD, H2_P), 1)
    y_ref[...] = (y + (col == BIAS_COL).astype(jnp.float32)).astype(jnp.bfloat16)


def streamer_kernel(y_ref, w2_ref, logit_ref):
    """logit_fc[3]: one answer tile per grid step; pure y @ w2_tile (b2 folded)."""
    logit_ref[...] = jnp.dot(y_ref[...], w2_ref[...],
                             preferred_element_type=jnp.float32)


# ------------------------------ params / glue --------------------------------
def make_params(key):
    """BERT-style init: normal(std=0.02) weights, zero biases, LN gamma=1."""
    ks = jax.random.split(key, 8)
    std = 0.02
    return {
        # toy encoder (stand-in for LXRTEncoder)
        "embed": jax.random.normal(ks[0], (VOCAB, HID), jnp.float32) * std,
        "wf":    jax.random.normal(ks[1], (FEAT_DIM, HID), jnp.float32) * std,
        "wp":    jax.random.normal(ks[2], (4, HID), jnp.float32) * std,
        "wpool": jax.random.normal(ks[3], (HID, HID), jnp.float32) * std,
        "bpool": jnp.zeros((HID,), jnp.float32),
        # logit_fc
        "w1":    jax.random.normal(ks[4], (HID, H2), jnp.float32) * std,
        "b1":    jnp.zeros((H2,), jnp.float32),
        "gamma": jnp.ones((H2,), jnp.float32),
        "beta":  jnp.zeros((H2,), jnp.float32),
        "w2":    jax.random.normal(ks[5], (H2, NUM_ANSWERS), jnp.float32) * std,
        "b2":    jnp.zeros((NUM_ANSWERS,), jnp.float32),
    }


def _pad2(x, rows, cols):
    return jnp.pad(x, ((0, rows - x.shape[0]), (0, cols - x.shape[1])))


def _pad_vec(x, width):
    return jnp.pad(x, (0, width - x.shape[0]))


def vqa_forward(feat, pos, sent_ids, params):
    """feat: (B, O, F) f32, pos: (B, O, 4) f32, sent_ids: (B, S) int32.
    Returns (logit: (B, NUM_ANSWERS), deconf_loss: scalar)."""
    bf16 = jnp.bfloat16

    # --- glue (encoder stand-in, front half): embedding lookup + f32 mean
    # pooling in the wrapper (pooling commutes with the linear projections).
    sent_emb = jnp.take(params["embed"], sent_ids, axis=0)        # (B, S, HID)
    sent_pool = jnp.mean(sent_emb, axis=1)                        # (B, HID) f32
    fp = jnp.concatenate([feat, pos], axis=-1)                    # (B, O, F+4)
    fp_pool = jnp.mean(fp, axis=1)                                # (B, F+4) f32

    fpp = _pad2(fp_pool, B_PAD, FP_P).astype(bf16)                # (8, FP_P)
    sentp = _pad2(sent_pool, B_PAD, HID_P)                        # (8, HID_P) f32

    wfp = _pad2(jnp.concatenate([params["wf"], params["wp"]], axis=0),
                FP_P, HID_P).astype(bf16)                         # (FP_P, HID_P)
    wpool = _pad2(params["wpool"], HID_P, HID_P).astype(bf16)
    w1 = _pad2(params["w1"], HID_P, H2_P).astype(bf16)

    # w2 padded, with b2 folded into the spare BIAS_COL row.
    w2 = _pad2(params["w2"], H2_P, ANS_P)
    w2 = w2.at[BIAS_COL, :NUM_ANSWERS].set(params["b2"]).astype(bf16)

    vecs = jnp.stack([_pad_vec(params["bpool"], VEC_W),
                      _pad_vec(params["b1"], VEC_W),
                      _pad_vec(params["gamma"], VEC_W),
                      _pad_vec(params["beta"], VEC_W)],
                     axis=0).astype(jnp.float32)                  # (4, VEC_W)

    # --- prologue: gridless, whole-array VMEM blocks (everything is tiny);
    # invariant weights are copied into VMEM exactly once.
    y = pl.pallas_call(
        prologue_kernel,
        out_shape=jax.ShapeDtypeStruct((B_PAD, H2_P), bf16),
    )(fpp, sentp, wfp, wpool, w1, vecs)

    # --- streamer: grid over answer tiles; axis is "parallel" (no carried
    # scratch) so v7x megacore can shard tiles across both TensorCores.
    grid_spec = pltpu.PrefetchScalarGridSpec(
        num_scalar_prefetch=0,
        grid=(ANS_P // TN,),
        in_specs=[
            pl.BlockSpec((B_PAD, H2_P), lambda j: (0, 0)),        # y (resident)
            pl.BlockSpec((H2_P, TN), lambda j: (0, j)),           # w2 tile
        ],
        out_specs=pl.BlockSpec((B_PAD, TN), lambda j: (0, j)),
    )

    logit_pad = pl.pallas_call(
        streamer_kernel,
        out_shape=jax.ShapeDtypeStruct((B_PAD, ANS_P), jnp.float32),
        grid_spec=grid_spec,
        compiler_params=pltpu.CompilerParams(
            dimension_semantics=("parallel",),
            # TODO(synk): re-derive per chip generation at real scale
            # (v7x: 64 MiB physical / 32 MiB scoped default; v5e: 16 MiB scoped).
            vmem_limit_bytes=32 * 1024 * 1024),
    )(y, w2)

    logit = logit_pad[:B, :NUM_ANSWERS]

    # TODO(synk): the real deconf_loss comes from inside LXRTEncoder; stubbed.
    deconf_loss = jnp.float32(0.0)
    return logit, deconf_loss


if __name__ == "__main__":
    key = jax.random.PRNGKey(0)
    k_feat, k_pos, k_sent, k_par = jax.random.split(key, 4)

    feat = jax.random.normal(k_feat, (B, NUM_OBJ, FEAT_DIM), jnp.float32)
    pos = jax.random.uniform(k_pos, (B, NUM_OBJ, 4), jnp.float32)
    sent_ids = jax.random.randint(k_sent, (B, SEQ_LEN), 0, VOCAB, jnp.int32)
    params = make_params(k_par)

    logit, deconf_loss = vqa_forward(feat, pos, sent_ids, params)
    jax.block_until_ready(logit)
    jax.block_until_ready(deconf_loss)

    assert logit.shape == (B, NUM_ANSWERS)
    assert logit.dtype == jnp.float32
    print("KERNEL_OK")
</pallas_src>

<mosaic_0001>
module attributes {stable_mosaic.version = 11 : i64} {
  func.func @prologue_kernel(%arg0: memref<8x128xbf16, #tpu.memory_space<vmem>>, %arg1: memref<8x128xf32, #tpu.memory_space<vmem>>, %arg2: memref<128x128xbf16, #tpu.memory_space<vmem>>, %arg3: memref<128x128xbf16, #tpu.memory_space<vmem>>, %arg4: memref<128x128xbf16, #tpu.memory_space<vmem>>, %arg5: memref<4x128xf32, #tpu.memory_space<vmem>>, %arg6: memref<8x128xbf16, #tpu.memory_space<vmem>>) attributes {dimension_semantics = [], scalar_prefetch = 0 : i64, scratch_operands = 0 : i64, tpu.core_type = #tpu.core_type<tc>} {
    %c0 = arith.constant 0 : index
    %c0_0 = arith.constant 0 : index
    %0 = vector.load %arg0[%c0, %c0_0] : memref<8x128xbf16, #tpu.memory_space<vmem>>, vector<8x128xbf16>
    %c0_1 = arith.constant 0 : index
    %c0_2 = arith.constant 0 : index
    %1 = vector.load %arg2[%c0_1, %c0_2] : memref<128x128xbf16, #tpu.memory_space<vmem>>, vector<128x128xbf16>
    %cst = arith.constant dense<0.000000e+00> : vector<8x128xf32>
    %2 = tpu.matmul %0, %1, %cst {dimension_numbers = #tpu.dot_dimension_numbers<[1], [0], [0], [1], [0, 0, 1, 1], [], []>} : vector<8x128xbf16>, vector<128x128xbf16>, vector<8x128xf32> -> vector<8x128xf32>
    %c0_3 = arith.constant 0 : index
    %c0_4 = arith.constant 0 : index
    %3 = vector.load %arg5[%c0_3, %c0_4] : memref<4x128xf32, #tpu.memory_space<vmem>>, vector<1x128xf32>
    %c0_5 = arith.constant 0 : index
    %c0_6 = arith.constant 0 : index
    %4 = vector.load %arg1[%c0_5, %c0_6] : memref<8x128xf32, #tpu.memory_space<vmem>>, vector<8x128xf32>
    %5 = arith.addf %2, %4 : vector<8x128xf32>
    %6 = arith.truncf %5 : vector<8x128xf32> to vector<8x128xbf16>
    %c0_7 = arith.constant 0 : index
    %c0_8 = arith.constant 0 : index
    %7 = vector.load %arg3[%c0_7, %c0_8] : memref<128x128xbf16, #tpu.memory_space<vmem>>, vector<128x128xbf16>
    %cst_9 = arith.constant dense<0.000000e+00> : vector<8x128xf32>
    %8 = tpu.matmul %6, %7, %cst_9 {dimension_numbers = #tpu.dot_dimension_numbers<[1], [0], [0], [1], [0, 0, 1, 1], [], []>} : vector<8x128xbf16>, vector<128x128xbf16>, vector<8x128xf32> -> vector<8x128xf32>
    %9 = vector.broadcast %3 : vector<1x128xf32> to vector<8x128xf32>
    %10 = arith.addf %8, %9 : vector<8x128xf32>
    %11 = math.tanh %10 : vector<8x128xf32>
    %c1 = arith.constant 1 : index
    %c0_10 = arith.constant 0 : index
    %12 = vector.load %arg5[%c1, %c0_10] : memref<4x128xf32, #tpu.memory_space<vmem>>, vector<1x128xf32>
    %c2 = arith.constant 2 : index
    %c0_11 = arith.constant 0 : index
    %13 = vector.load %arg5[%c2, %c0_11] : memref<4x128xf32, #tpu.memory_space<vmem>>, vector<1x128xf32>
    %c3 = arith.constant 3 : index
    %c0_12 = arith.constant 0 : index
    %14 = vector.load %arg5[%c3, %c0_12] : memref<4x128xf32, #tpu.memory_space<vmem>>, vector<1x128xf32>
    %15 = arith.truncf %11 : vector<8x128xf32> to vector<8x128xbf16>
    %c0_13 = arith.constant 0 : index
    %c0_14 = arith.constant 0 : index
    %16 = vector.load %arg4[%c0_13, %c0_14] : memref<128x128xbf16, #tpu.memory_space<vmem>>, vector<128x128xbf16>
    %cst_15 = arith.constant dense<0.000000e+00> : vector<8x128xf32>
    %17 = tpu.matmul %15, %16, %cst_15 {dimension_numbers = #tpu.dot_dimension_numbers<[1], [0], [0], [1], [0, 0, 1, 1], [], []>} : vector<8x128xbf16>, vector<128x128xbf16>, vector<8x128xf32> -> vector<8x128xf32>
    %18 = vector.broadcast %12 : vector<1x128xf32> to vector<8x128xf32>
    %19 = arith.addf %17, %18 : vector<8x128xf32>
    %cst_16 = arith.constant 5.000000e-01 : f32
    %20 = vector.broadcast %cst_16 : f32 to vector<8x128xf32>
    %21 = arith.mulf %20, %19 : vector<8x128xf32>
    %cst_17 = arith.constant 4.471500e-02 : f32
    %22 = vector.broadcast %cst_17 : f32 to vector<8x128xf32>
    %23 = arith.mulf %22, %19 : vector<8x128xf32>
    %24 = arith.mulf %23, %19 : vector<8x128xf32>
    %25 = arith.mulf %24, %19 : vector<8x128xf32>
    %26 = arith.addf %19, %25 : vector<8x128xf32>
    %cst_18 = arith.constant 0.797884583 : f32
    %27 = vector.broadcast %cst_18 : f32 to vector<8x128xf32>
    %28 = arith.mulf %27, %26 : vector<8x128xf32>
    %29 = math.tanh %28 : vector<8x128xf32>
    %cst_19 = arith.constant 1.000000e+00 : f32
    %30 = vector.broadcast %cst_19 : f32 to vector<8x128xf32>
    %31 = arith.addf %30, %29 : vector<8x128xf32>
    %32 = arith.mulf %21, %31 : vector<8x128xf32>
    %cst_20 = arith.constant dense<0.000000e+00> : vector<8xf32>
    %33 = vector.multi_reduction <add>, %32, %cst_20 [1] : vector<8x128xf32> to vector<8xf32>
    %34 = vector.shape_cast %33 : vector<8xf32> to vector<8x1xf32>
    %cst_21 = arith.constant 1.562500e-02 : f32
    %35 = vector.broadcast %cst_21 : f32 to vector<8x1xf32>
    %36 = arith.mulf %34, %35 : vector<8x1xf32>
    %37 = arith.mulf %32, %32 : vector<8x128xf32>
    %cst_22 = arith.constant dense<0.000000e+00> : vector<8xf32>
    %38 = vector.multi_reduction <add>, %37, %cst_22 [1] : vector<8x128xf32> to vector<8xf32>
    %39 = vector.shape_cast %38 : vector<8xf32> to vector<8x1xf32>
    %cst_23 = arith.constant 1.562500e-02 : f32
    %40 = vector.broadcast %cst_23 : f32 to vector<8x1xf32>
    %41 = arith.mulf %39, %40 : vector<8x1xf32>
    %42 = arith.mulf %36, %36 : vector<8x1xf32>
    %43 = arith.subf %41, %42 : vector<8x1xf32>
    %44 = vector.broadcast %36 : vector<8x1xf32> to vector<8x128xf32>
    %45 = arith.subf %32, %44 : vector<8x128xf32>
    %cst_24 = arith.constant 9.99999996E-13 : f32
    %46 = vector.broadcast %cst_24 : f32 to vector<8x1xf32>
    %47 = arith.addf %43, %46 : vector<8x1xf32>
    %48 = math.rsqrt %47 : vector<8x1xf32>
    %49 = vector.broadcast %48 : vector<8x1xf32> to vector<8x128xf32>
    %50 = arith.mulf %45, %49 : vector<8x128xf32>
    %51 = vector.broadcast %13 : vector<1x128xf32> to vector<8x128xf32>
    %52 = arith.mulf %50, %51 : vector<8x128xf32>
    %53 = vector.broadcast %14 : vector<1x128xf32> to vector<8x128xf32>
    %54 = arith.addf %52, %53 : vector<8x128xf32>
    %55 = tpu.iota {dimensions = array<i32: 1>} : vector<8x128xi32>
    %c64_i32 = arith.constant 64 : i32
    %56 = vector.broadcast %c64_i32 : i32 to vector<8x128xi32>
    %57 = arith.cmpi eq, %55, %56 : vector<8x128xi32>
    %58 = arith.extui %57 : vector<8x128xi1> to vector<8x128xi32>
    %59 = arith.sitofp %58 : vector<8x128xi32> to vector<8x128xf32>
    %60 = arith.addf %54, %59 : vector<8x128xf32>
    %61 = arith.truncf %60 : vector<8x128xf32> to vector<8x128xbf16>
    %c0_25 = arith.constant 0 : index
    %c0_26 = arith.constant 0 : index
    %62 = vector.load %arg6[%c0_25, %c0_26] : memref<8x128xbf16, #tpu.memory_space<vmem>>, vector<8x128xbf16>
    tpu.vector_store %arg6[%c0_25, %c0_26], %61 {strides = array<i32>} : memref<8x128xbf16, #tpu.memory_space<vmem>>, vector<8x128xbf16>,
    return
  }
}

</mosaic_0001>

<bundles_post_ra>
// kernel: tpu_custom_call.1
= control target key start
LH: loop header
LB: loop body
LE: loop exit
PB: predicated region body
PF: predicated region fallthrough
CT: control target
= control target key end

     0   :  { %11 = vsyncpa [#allocation3], 0  ;;  %s768_s0 = inlined_call_operand.hbm [shape: bf16[8,128], index: 0, kind: input, shape index: {}]   ;;  %s769_s1 = inlined_call_operand.hbm [shape: f32[8,128], index: 1, kind: input, shape index: {}]   ;;  %s770_s2 = inlined_call_operand.hbm [shape: bf16[128,128], index: 2, kind: input, shape index: {}]   ;;  %s771_s3 = inlined_call_operand.hbm [shape: bf16[128,128], index: 3, kind: input, shape index: {}]   ;;  %s772_s4 = inlined_call_operand.hbm [shape: bf16[128,128], index: 4, kind: input, shape index: {}]   ;;  %s773_s5 = inlined_call_operand.vmem [shape: f32[4,128], index: 5, kind: input, shape index: {}]   ;;  %s774_s6 = inlined_call_operand.hbm [shape: bf16[8,128], index: 6, kind: output, shape index: {}]  }
   0x1   :  { %12 = vsyncpa [#allocation6], 0 }
   0x2   :  { %13 = vsyncpa [#allocation9], 0  ;;  %s31_s23 = sshll.u32 %s769_s1, 4  ;;  %s32_s23 = int_to_ptr.hbm [resolvable:$true] %s31_s23 }
   0x3   :  { %14 = vsyncpa [#allocation4], 0  ;;  %s694_s24 = smov [#allocation5]   ;;  %s54_s28 = sshll.u32 %s771_s3, 4  ;;  %s55_s28 = int_to_ptr.hbm [resolvable:$true] %s54_s28 }
   0x4   :  { %s33_s25 = sshll.u32 %s694_s24, 4  ;;  %s695_s29 = smov [#allocation8]   ;;  %s34_s25 = int_to_ptr.vmem [resolvable:$true] %s33_s25 }
   0x5   :  { %36 = dma.hbm_to_vmem [thread:$0]  %s32_s23, 128, %s34_s25, [#allocation6]  }
   0x6   :  { %s56_s30 = sshll.u32 %s695_s29, 4  ;;  %s20_s9 = sshll.u32 %s768_s0, 4  ;;  %s57_s30 = int_to_ptr.vmem [resolvable:$true] %s56_s30  ;;  %s21_s9 = int_to_ptr.hbm [resolvable:$true] %s20_s9 }
   0x7   :  { %s696_s1 = smov 64   ;;  %s697_s10 = smov 4  }
   0x8   :  { %62 = dma.hbm_to_vmem [thread:$0]  %s55_s28, 1024, %s57_s30, [#allocation9], %s696_s1, %s696_s1, %s697_s10  }
   0x9   :  { %s41_s13 = sshll.u32 %s770_s2, 4  ;;  %s698_s14 = smov [#allocation2]   ;;  %s42_s13 = int_to_ptr.hbm [resolvable:$true] %s41_s13 }
   0xa   :  { %s22_s15 = sshll.u32 %s698_s14, 4  ;;  %s699_s3 = smov [#allocation7]   ;;  %s23_s15 = int_to_ptr.vmem [resolvable:$true] %s22_s15 }
   0xb   :  { %25 = dma.hbm_to_vmem [thread:$0]  %s21_s9, 64, %s23_s15, [#allocation3]  }
   0xc   :  { %s43_s16 = sshll.u32 %s699_s3, 4  ;;  %s67_s0 = sshll.u32 %s772_s4, 4  ;;  %s44_s16 = int_to_ptr.vmem [resolvable:$true] %s43_s16  ;;  %s68_s0 = int_to_ptr.hbm [resolvable:$true] %s67_s0 }
   0xd   :  { %49 = dma.hbm_to_vmem [thread:$0]  %s42_s13, 1024, %s44_s16, [#allocation6], %s696_s1, %s696_s1, %s697_s10  }
   0xe   :  { %s700_s19 = smov [#allocation10]  }
   0xf   :  { %s69_s20 = sshll.u32 %s700_s19, 4  ;;  %s70_s20 = int_to_ptr.vmem [resolvable:$true] %s69_s20 }
  0x10   :  { %75 = dma.hbm_to_vmem [thread:$0]  %s68_s0, 1024, %s70_s20, [#allocation9], %s696_s1, %s696_s1, %s697_s10  }
  0x11   :  { %686 = dma.done.wait [#allocation3], 64  }
  0x12   :  { %687 = vsyncadd [#allocation3], 4294967232 }
  0x13   :  { %688 = dma.done.wait [#allocation6], 1152  }
  0x14   :  { %689 = vsyncadd [#allocation6], 4294966144 }
  0x15   :  { %690 = dma.done.wait [#allocation9], 2048  }
  0x16   :  { %691 = vsyncadd [#allocation9], 4294965248  ;;  %v506_v0 = vld [vmem:[#allocation7 + $0x38] sm:$0xff]  ;;  %v505_v1 = vld [vmem:[#allocation7 + $0x30] sm:$0xff]  ;;  %v375_v60 = vlaneseq  ;;  %s702_s27 = smov [#allocation11]   ;;  %s390_s7 = sshll.u32 %s774_s6, 4  ;;  %s391_s7 = int_to_ptr.hbm [resolvable:$true] %s390_s7 }
  0x17   :  { %165 = vmatpush.bf16.msra.mxu0 %v506_v0  ;;  %v514_v2 = vld [vmem:[#allocation8 + $0x38] sm:$0xff]  ;;  %v504_v3 = vld [vmem:[#allocation7 + $0x28] sm:$0xff]  ;;  %v513_v4 = vld [vmem:[#allocation8 + $0x30] sm:$0xff]  ;;  %s388_s28 = sshll.u32 %s702_s27, 4  ;;  %s389_s28 = int_to_ptr.vmem [resolvable:$true] %s388_s28 }
  0x18   :  { %244 = vmatpush.bf16.msra.mxu1 %v514_v2  ;;  %v512_v5 = vld [vmem:[#allocation8 + $0x28] sm:$0xff]  ;;  %v503_v6 = vld [vmem:[#allocation7 + $0x20] sm:$0xff]  ;;  %v502_v8 = vld [vmem:[#allocation7 + $0x18] sm:$0xff]  ;;  %v376_v63 = vand.u32 127, %v375_v60 }
  0x19   :  { %v511_v7 = vld [vmem:[#allocation8 + $0x20] sm:$0xff]  ;;  %v510_v9 = vld [vmem:[#allocation8 + $0x18] sm:$0xff]  ;;  %v501_v10 = vld [vmem:[#allocation7 + $0x10] sm:$0xff] }
  0x1a   :  { %v509_v11 = vld [vmem:[#allocation8 + $0x10] sm:$0xff]  ;;  %v500_v12 = vld [vmem:[#allocation7 + $0x8] sm:$0xff]  ;;  %v499_v14 = vld [vmem:[#allocation7] sm:$0xff]  ;;  %vm377_vm3 = vcmp.eq.s32.totalorder %v376_v63, 64 }
  0x1b   :  { %166 = vmatpush.bf16.msra.mxu0 %v505_v1  ;;  %v508_v13 = vld [vmem:[#allocation8 + $0x8] sm:$0xff]  ;;  %v98_v15 = vld [vmem:[#allocation2] sm:$0xf]  ;;  %v507_v16 = vld [vmem:[#allocation8] sm:$0xff] }
  0x1c   :  { %245 = vmatpush.bf16.msra.mxu1 %v513_v4  ;;  %v522_v17 = vld [vmem:[#allocation10 + $0x38] sm:$0xff]  ;;  %v521_v18 = vld [vmem:[#allocation10 + $0x30] sm:$0xff]  ;;  %v520_v19 = vld [vmem:[#allocation10 + $0x28] sm:$0xff] }
  0x1d   :  { %327 = vmatpush.bf16.msra.mxu2 %v522_v17  ;;  %v519_v20 = vld [vmem:[#allocation10 + $0x20] sm:$0xff]  ;;  %v518_v21 = vld [vmem:[#allocation10 + $0x18] sm:$0xff]  ;;  %v517_v27 = vld [vmem:[#allocation10 + $0x10] sm:$0xff] }
  0x1e   :  { %v116_v22 = vld [vmem:[#allocation5] sm:$0xff]  ;;  %v516_v28 = vld [vmem:[#allocation10 + $0x8] sm:$0xff]  ;;  %v515_v29 = vld [vmem:[#allocation10] sm:$0xff] }
  0x1f   :  { %167 = vmatpush.bf16.msra.mxu0 %v504_v3  ;;  %v532_v30 = vld [vmem:[%s773_s5] ss:$0 sm:$0xff]  ;;  %v533_v36 = vld [vmem:[%s773_s5 + $0x1] ss:$0 sm:$0xff]  ;;  %v534_v2 = vld [vmem:[%s773_s5 + $0x2] ss:$0 sm:$0xff] }
  0x20   :  { %246 = vmatpush.bf16.msra.mxu1 %v512_v5  ;;  %v535_v5 = vld [vmem:[%s773_s5 + $0x3] ss:$0 sm:$0xff] }
  0x21   :  { %328 = vmatpush.bf16.msra.mxu2 %v521_v18 }
  0x23   :  { %168 = vmatpush.bf16.msra.mxu0 %v503_v6 }
  0x24   :  { %247 = vmatpush.bf16.msra.mxu1 %v511_v7  ;;  %v701_v7 = vmov 0.0  }
  0x25   :  { %329 = vmatpush.bf16.msra.mxu2 %v520_v19 }
  0x27   :  { %169 = vmatpush.bf16.msra.mxu0 %v502_v8  ;;  %v498_v8 = vsel %vm377_vm3, 1.0, %v701_v7 }
  0x28   :  { %248 = vmatpush.bf16.msra.mxu1 %v510_v9 }
  0x29   :  { %330 = vmatpush.bf16.msra.mxu2 %v519_v20 }
  0x2b   :  { %170 = vmatpush.bf16.msra.mxu0 %v501_v10 }
  0x2c   :  { %249 = vmatpush.bf16.msra.mxu1 %v509_v11 }
  0x2d   :  { %331 = vmatpush.bf16.msra.mxu2 %v518_v21 }
  0x2f   :  { %171 = vmatpush.bf16.msra.mxu0 %v500_v12 }
  0x30   :  { %250 = vmatpush.bf16.msra.mxu1 %v508_v13 }
  0x31   :  { %332 = vmatpush.bf16.msra.mxu2 %v517_v27 }
  0x33   :  { %172 = vmatpush.bf16.msra.mxu0 %v499_v14 }
  0x34   :  { %251 = vmatpush.bf16.msra.mxu1 %v507_v16 }
  0x35   :  { %333 = vmatpush.bf16.msra.mxu2 %v516_v28 }
  0x36   :  { %173 = vmatmul.bf16.vlgmr.msra.gmra.mxu0 %v98_v15 }
  0x39   :  { %334 = vmatpush.bf16.msra.mxu2 %v515_v29 }
  0xb3   :  { %v174_v23 = vpop.f32.mrf.mxu0 }
  0xb4   :  { %v175_v24 = vadd.f32 %v174_v23, %v116_v22 }
  0xb6   :  { %v178_v25 = vpack.c.bf16 %v175_v24, %v175_v24 }
  0xb8   :  { %252 = vmatmul.bf16.vlgmr.msra.gmra.mxu1 %v178_v25 }
  0xbb   :  { %v176_v26 = vpop.f32.mrf.mxu0 }
 0x135   :  { %v253_v31 = vpop.f32.mrf.mxu1 }
 0x136   :  { %v254_v32 = vadd.f32 %v532_v30, %v253_v31 }
 0x138   :  { %536 = vtanh.f32 %v254_v32 }
 0x13d   :  { %v255_v33 = vpop.f32.mrf.mxu1 }
 0x13e   :  { %v537_v34 = vpop.eup %536 }
 0x13f   :  { %v261_v35 = vpack.c.bf16 %v537_v34, %v537_v34 }
 0x141   :  { %335 = vmatmul.bf16.vlgmr.msra.gmra.mxu2 %v261_v35 }
 0x1c4   :  { %v336_v37 = vpop.f32.mrf.mxu2 }
 0x1c5   :  { %v337_v38 = vadd.f32 %v533_v36, %v336_v37 }
 0x1c7   :  { %v341_v39 = vmul.f32 0.044715, %v337_v38  ;;  %v340_v46 = vmul.f32 0.5, %v337_v38 }
 0x1c9   :  { %v342_v40 = vmul.f32 %v341_v39, %v337_v38 }
 0x1cb   :  { %v343_v41 = vmul.f32 %v342_v40, %v337_v38 }
 0x1cc   :  { %v338_v42 = vpop.f32.mrf.mxu2 }
 0x1cd   :  { %v344_v43 = vadd.f32 %v343_v41, %v337_v38 }
 0x1cf   :  { %v345_v44 = vmul.f32 0.7978846, %v344_v43 }
 0x1d1   :  { %538 = vtanh.f32 %v345_v44 }
 0x1d7   :  { %v539_v45 = vpop.eup %538 }
 0x1d8   :  { %v347_v47 = vadd.f32 1.0, %v539_v45 }
 0x1da   :  { %v348_v48 = vmul.f32 %v347_v47, %v340_v46 }
 0x1dc   :  { %349 = vadd.xlane.f32.xlu0 %v348_v48  ;;  %v352_v49 = vmul.f32 %v348_v48, %v348_v48 }
 0x1e4   :  { %353 = vadd.xlane.f32.xlu0 %v352_v49 }
 0x24f   :  { %v350_v50 = vpop.xlane.xlu0 %349 }
 0x250   :  { %v351_v51 = vmul.f32 0.015625, %v350_v50 }
 0x252   :  { %v356_v53 = vmul.f32 %v351_v51, %v351_v51  ;;  %v358_v1 = vsub.f32 %v348_v48, %v351_v51 }
 0x257   :  { %v354_v52 = vpop.xlane.xlu0 %353 }
 0x258   :  { %v355_v54 = vmul.f32 0.015625, %v354_v52 }
 0x25a   :  { %v357_v55 = vsub.f32 %v355_v54, %v356_v53 }
 0x25c   :  { %v359_v56 = vadd.f32 1e-12, %v357_v55 }
 0x25e   :  { %540 = vrsqrt.f32 %v359_v56  ;;  %vm366_vm1 = vweird.f32 %v359_v56 }
 0x264   :  { %v541_v57 = vpop.eup %540 }
 0x265   :  { %v361_v58 = vmul.f32 %v541_v57, %v359_v56  ;;  %vm367_vm0 = vweird.f32 %v541_v57 }
 0x266   :  { %vm368_vm2 = vmor %vm366_vm1, %vm367_vm0 }
 0x267   :  { %v362_v59 = vmul.f32 %v541_v57, %v361_v58 }
 0x269   :  { %v363_v61 = vmul.f32 0.5, %v362_v59 }
 0x26b   :  { %v364_v62 = vsub.f32 1.5, %v363_v61 }
 0x26d   :  { %v365_v0 = vmul.f32 %v541_v57, %v364_v62 }
 0x26f   :  { %v369_v3 = vsel %vm368_vm2, %v541_v57, %v365_v0 }
 0x270   :  { %v370_v4 = vmul.f32 %v369_v3, %v358_v1 }
 0x272   :  { %v372_v6 = vmul.f32 %v534_v2, %v370_v4 }
 0x274   :  { %v374_v9 = vadd.f32 %v535_v5, %v372_v6 }
 0x276   :  { %v380_v10 = vadd.f32 %v498_v8, %v374_v9 }
 0x278   :  { %v381_v11 = vpack.c.bf16 %v380_v10, %v380_v10 }
 0x27a   :  { %382 = vst [vmem:[#allocation11] sm:$0xf] %v381_v11 }
 0x27b   :  { %393 = dma.vmem_to_hbm [thread:$0]  %s389_s28, 64, %s391_s7, [#allocation4]  }
 0x27c   :  { %692 = dma.done.wait [#allocation4], 64  }
 0x27d   :  { %693 = vsyncadd [#allocation4], 4294967232 }
 0x27e   :  { %398 = vsyncpa [#allocation3], 1 }
 0x27f   :  { %399 = vsyncpa [#allocation6], 1 }
 0x280   :  { %400 = vsyncpa [#allocation9], 1 }
 0x281   :  { %401 = vsyncpa [#allocation4], 1 }

</bundles_post_ra>
